<compile_context>
chip_gen: v7x
topology: tpu7x:2x2x1
jax: 0.10.0
libtpu: 0.0.40
codegen_flags: <defaults>
</compile_context>

<pallas_src>
import math

import jax
import jax.numpy as jnp
from jax.experimental import pallas as pl
from jax.experimental.pallas import tpu as pltpu


# ---------------------------------------------------------------------------
# Kernel
# ---------------------------------------------------------------------------
def _encoder_kernel(x_ref, w1_ref, b1_ref, w2_ref, b2_ref, o_ref):
    # Hidden layer: (TB, Din) @ (Din, 128) + (1, 128) -> ReLU   (MXU + VPU)
    h = (
        jnp.dot(x_ref[...], w1_ref[...], preferred_element_type=jnp.float32)
        + b1_ref[...]
    )
    h = jnp.maximum(h, 0.0)
    # Output layer: (TB, 128) @ (128, Dout) + (1, Dout)   (MXU; Dout-wide store)
    out = (
        jnp.dot(h, w2_ref[...], preferred_element_type=jnp.float32) + b2_ref[...]
    )
    o_ref[...] = out.astype(o_ref.dtype)


# ---------------------------------------------------------------------------
# Wrapper
# ---------------------------------------------------------------------------
def _round_up(x, m):
    return ((x + m - 1) // m) * m


def encoder_encode(x, w1, b1, w2, b2, *, block_b=512):
    """Encoder.encode: x (B, input_dim) -> (B, representation_dim), all float32.

    w1: (input_dim, hidden)   -- transposed PyTorch Linear weight
    b1: (hidden,)
    w2: (hidden, representation_dim)
    b2: (representation_dim,)
    """
    B, Din = x.shape
    H = w1.shape[1]          # 100
    Dout = w2.shape[1]       # representation_dim (8)

    HP = 128                 # padded hidden dim (lane-aligned for both matmuls)

    # --- pad hidden dim to a clean 128-lane layout (zeros keep semantics exact) ---
    w1p = jnp.pad(w1.astype(jnp.float32), ((0, 0), (0, HP - H)))
    b1p = jnp.pad(b1.astype(jnp.float32).reshape(1, H), ((0, 0), (0, HP - H)))
    w2p = jnp.pad(w2.astype(jnp.float32), ((0, HP - H), (0, 0)))  # (HP, Dout)
    b2p = b2.astype(jnp.float32).reshape(1, Dout)

    # --- batch tiling: TB rows per grid step, batch padded to a multiple of TB ---
    TB = _round_up(min(block_b, _round_up(B, 8)), 8)
    Bp = _round_up(B, TB)
    xp = x.astype(jnp.float32)
    if Bp != B:
        xp = jnp.pad(xp, ((0, Bp - B), (0, 0)))

    grid = (Bp // TB,)

    flops = 2 * Bp * (Din * HP + HP * Dout)
    bytes_accessed = 4 * (
        Bp * Din + Din * HP + HP + HP * Dout + Dout + Bp * Dout
    )

    out_padded = pl.pallas_call(
        _encoder_kernel,
        out_shape=jax.ShapeDtypeStruct((Bp, Dout), jnp.float32),
        grid=grid,
        in_specs=[
            pl.BlockSpec((TB, Din), lambda i: (i, 0)),    # x: streamed over batch
            pl.BlockSpec((Din, HP), lambda i: (0, 0)),    # w1: VMEM-resident
            pl.BlockSpec((1, HP), lambda i: (0, 0)),      # b1
            pl.BlockSpec((HP, Dout), lambda i: (0, 0)),   # w2
            pl.BlockSpec((1, Dout), lambda i: (0, 0)),    # b2
        ],
        out_specs=pl.BlockSpec((TB, Dout), lambda i: (i, 0)),
        compiler_params=pltpu.CompilerParams(
            dimension_semantics=("parallel",),
        ),
        cost_estimate=pl.CostEstimate(
            flops=flops, transcendentals=0, bytes_accessed=bytes_accessed
        ),
    )(xp, w1p, b1p, w2p, b2p)

    # Strip batch padding only if it was added.
    return out_padded if Bp == B else out_padded[:B]


def encoder_forward(x, w1, b1, w2, b2, *, block_b=512):
    """Encoder.forward: returns (g(x), 0) like the PyTorch module."""
    return encoder_encode(x, w1, b1, w2, b2, block_b=block_b), 0


# ---------------------------------------------------------------------------
# Param init (mimics torch.nn.Linear default Kaiming-uniform)
# ---------------------------------------------------------------------------
def init_params(key, input_dim=104, hidden=100, representation_dim=8):
    k1, k2, k3, k4 = jax.random.split(key, 4)
    bound1 = 1.0 / math.sqrt(input_dim)
    bound2 = 1.0 / math.sqrt(hidden)
    # Stored already transposed: (in, out)
    w1 = jax.random.uniform(k1, (input_dim, hidden), jnp.float32, -bound1, bound1)
    b1 = jax.random.uniform(k2, (hidden,), jnp.float32, -bound1, bound1)
    w2 = jax.random.uniform(
        k3, (hidden, representation_dim), jnp.float32, -bound2, bound2
    )
    b2 = jax.random.uniform(
        k4, (representation_dim,), jnp.float32, -bound2, bound2
    )
    return w1, b1, w2, b2


if __name__ == "__main__":
    key = jax.random.PRNGKey(0)
    k_in, k_par = jax.random.split(key)

    B, Din, H, Dout = 16, 104, 100, 8  # batch, input_dim, hidden, representation_dim
    x = jax.random.normal(k_in, (B, Din), dtype=jnp.float32)
    w1, b1, w2, b2 = init_params(k_par, Din, H, Dout)

    enc, zero = encoder_forward(x, w1, b1, w2, b2)
    jax.block_until_ready(enc)

    # Pure-JAX reference of the forward semantics.
    ref = jnp.maximum(x @ w1 + b1[None, :], 0.0) @ w2 + b2[None, :]
    assert enc.shape == (B, Dout)
    assert zero == 0
    assert jnp.allclose(enc, ref, atol=1e-5, rtol=1e-5)

    # Also exercise a non-divisible batch to hit the padding path.
    xb = jax.random.normal(k_in, (13, Din), dtype=jnp.float32)
    enc2, _ = encoder_forward(xb, w1, b1, w2, b2)
    jax.block_until_ready(enc2)
    ref2 = jnp.maximum(xb @ w1 + b1[None, :], 0.0) @ w2 + b2[None, :]
    assert enc2.shape == (13, Dout)
    assert jnp.allclose(enc2, ref2, atol=1e-5, rtol=1e-5)

    print("KERNEL_OK")
</pallas_src>

<mosaic_0001>
module attributes {stable_mosaic.version = 11 : i64} {
  func.func @_encoder_kernel(%arg0: i32, %arg1: memref<16x104xf32, #tpu.memory_space<vmem>>, %arg2: memref<104x128xf32, #tpu.memory_space<vmem>>, %arg3: memref<1x128xf32, #tpu.memory_space<vmem>>, %arg4: memref<128x8xf32, #tpu.memory_space<vmem>>, %arg5: memref<1x8xf32, #tpu.memory_space<vmem>>, %arg6: memref<16x8xf32, #tpu.memory_space<vmem>>) attributes {dimension_semantics = [#tpu.dimension_semantics<parallel>], iteration_bounds = array<i64: 1>, scalar_prefetch = 0 : i64, scratch_operands = 0 : i64, tpu.core_type = #tpu.core_type<tc>, window_params = [{transform_indices = @transform_0, window_bounds = array<i64: 16, 104>}, {pipeline_mode = #tpu.pipeline_mode<synchronous>, transform_indices = @transform_1, window_bounds = array<i64: 104, 128>}, {pipeline_mode = #tpu.pipeline_mode<synchronous>, transform_indices = @transform_2, window_bounds = array<i64: 1, 128>}, {pipeline_mode = #tpu.pipeline_mode<synchronous>, transform_indices = @transform_3, window_bounds = array<i64: 128, 8>}, {pipeline_mode = #tpu.pipeline_mode<synchronous>, transform_indices = @transform_4, window_bounds = array<i64: 1, 8>}, {transform_indices = @transform_5, window_bounds = array<i64: 16, 8>}]} {
    %c0 = arith.constant 0 : index
    %c0_0 = arith.constant 0 : index
    %0 = vector.load %arg1[%c0, %c0_0] : memref<16x104xf32, #tpu.memory_space<vmem>>, vector<16x104xf32>
    %c0_1 = arith.constant 0 : index
    %c0_2 = arith.constant 0 : index
    %1 = vector.load %arg2[%c0_1, %c0_2] : memref<104x128xf32, #tpu.memory_space<vmem>>, vector<104x128xf32>
    %cst = arith.constant dense<0.000000e+00> : vector<16x128xf32>
    %2 = tpu.matmul %0, %1, %cst {dimension_numbers = #tpu.dot_dimension_numbers<[1], [0], [0], [1], [0, 0, 1, 1], [], []>} : vector<16x104xf32>, vector<104x128xf32>, vector<16x128xf32> -> vector<16x128xf32>
    %c0_3 = arith.constant 0 : index
    %c0_4 = arith.constant 0 : index
    %3 = vector.load %arg3[%c0_3, %c0_4] : memref<1x128xf32, #tpu.memory_space<vmem>>, vector<1x128xf32>
    %4 = vector.broadcast %3 : vector<1x128xf32> to vector<16x128xf32>
    %5 = arith.addf %2, %4 : vector<16x128xf32>
    %cst_5 = arith.constant 0.000000e+00 : f32
    %6 = vector.broadcast %cst_5 : f32 to vector<16x128xf32>
    %7 = arith.maximumf %5, %6 : vector<16x128xf32>
    %c0_6 = arith.constant 0 : index
    %c0_7 = arith.constant 0 : index
    %8 = vector.load %arg4[%c0_6, %c0_7] : memref<128x8xf32, #tpu.memory_space<vmem>>, vector<128x8xf32>
    %cst_8 = arith.constant dense<0.000000e+00> : vector<16x8xf32>
    %9 = tpu.matmul %7, %8, %cst_8 {dimension_numbers = #tpu.dot_dimension_numbers<[1], [0], [0], [1], [0, 0, 1, 1], [], []>} : vector<16x128xf32>, vector<128x8xf32>, vector<16x8xf32> -> vector<16x8xf32>
    %c0_9 = arith.constant 0 : index
    %c0_10 = arith.constant 0 : index
    %10 = vector.load %arg5[%c0_9, %c0_10] : memref<1x8xf32, #tpu.memory_space<vmem>>, vector<1x8xf32>
    %11 = vector.broadcast %10 : vector<1x8xf32> to vector<16x8xf32>
    %12 = arith.addf %9, %11 : vector<16x8xf32>
    %c0_11 = arith.constant 0 : index
    %c0_12 = arith.constant 0 : index
    %13 = vector.load %arg6[%c0_11, %c0_12] : memref<16x8xf32, #tpu.memory_space<vmem>>, vector<16x8xf32>
    tpu.vector_store %arg6[%c0_11, %c0_12], %12 {strides = array<i32>} : memref<16x8xf32, #tpu.memory_space<vmem>>, vector<16x8xf32>,
    return
  }
  func.func @transform_0(%arg0: i32) -> (i32, i32) {
    %c0_i32 = arith.constant 0 : i32
    %c0_i32_0 = arith.constant 0 : i32
    return %arg0, %c0_i32 : i32, i32
  }
  func.func @transform_1(%arg0: i32) -> (i32, i32) {
    %c0_i32 = arith.constant 0 : i32
    %c0_i32_0 = arith.constant 0 : i32
    %c0_i32_1 = arith.constant 0 : i32
    return %c0_i32, %c0_i32_0 : i32, i32
  }
  func.func @transform_2(%arg0: i32) -> (i32, i32) {
    %c0_i32 = arith.constant 0 : i32
    %c0_i32_0 = arith.constant 0 : i32
    %c0_i32_1 = arith.constant 0 : i32
    return %c0_i32, %c0_i32_0 : i32, i32
  }
  func.func @transform_3(%arg0: i32) -> (i32, i32) {
    %c0_i32 = arith.constant 0 : i32
    %c0_i32_0 = arith.constant 0 : i32
    %c0_i32_1 = arith.constant 0 : i32
    return %c0_i32, %c0_i32_0 : i32, i32
  }
  func.func @transform_4(%arg0: i32) -> (i32, i32) {
    %c0_i32 = arith.constant 0 : i32
    %c0_i32_0 = arith.constant 0 : i32
    %c0_i32_1 = arith.constant 0 : i32
    return %c0_i32, %c0_i32_0 : i32, i32
  }
  func.func @transform_5(%arg0: i32) -> (i32, i32) {
    %c0_i32 = arith.constant 0 : i32
    %c0_i32_0 = arith.constant 0 : i32
    return %arg0, %c0_i32 : i32, i32
  }
}

</mosaic_0001>

<bundles_post_ra>
// kernel: tpu_custom_call.1
= control target key start
LH: loop header
LB: loop body
LE: loop exit
PB: predicated region body
PF: predicated region fallthrough
CT: control target
= control target key end

     0   :  { %vm42_vm0 = vcmask 850944   ;;  %vm224_vm1 = vcmask 64512   ;;  %s525_s1 = inlined_call_operand.vmem [shape: f32[104,128], index: 1, kind: input, shape index: {}]   ;;  %s526_s0 = inlined_call_operand.vmem [shape: f32[16,104], index: 0, kind: input, shape index: {}]   ;;  %s527_s3 = inlined_call_operand.vmem [shape: f32[128,8], index: 3, kind: input, shape index: {}]   ;;  %s528_s2 = inlined_call_operand.vmem [shape: f32[1,128], index: 2, kind: input, shape index: {}]   ;;  %s529_s4 = inlined_call_operand.vmem [shape: f32[1,8], index: 4, kind: input, shape index: {}]   ;;  %s530_s5 = inlined_call_operand.vmem [shape: f32[16,8], index: 5, kind: output, shape index: {}]  }
   0x1   :  { %v22_v0 = vld [vmem:[%s525_s1] sm:$0xff]  ;;  %v23_v1 = vld [vmem:[%s525_s1 + $0x8] sm:$0xff]  ;;  %v24_v2 = vld [vmem:[%s525_s1 + $0x10] sm:$0xff] }
   0x2   :  { %v332_v3 = vpack.c.bf16 %v23_v1, %v22_v0  ;;  %v25_v4 = vld [vmem:[%s525_s1 + $0x18] sm:$0xff]  ;;  %v26_v6 = vld [vmem:[%s525_s1 + $0x20] sm:$0xff]  ;;  %v27_v7 = vld [vmem:[%s525_s1 + $0x28] sm:$0xff] }
   0x3   :  { %v336_v5 = vpack.c.bf16 %v25_v4, %v24_v2  ;;  %v20_v8 = vld [vmem:[%s526_s0] sm:$0xff]  ;;  %v340_v9 = vpack.c.bf16 %v27_v7, %v26_v6  ;;  %v127_v11 = vld [vmem:[%s527_s3 + $0x8] sm:$0xff]  ;;  %v128_v12 = vld [vmem:[%s527_s3 + $0x10] sm:$0xff] }
   0x4   :  { %333 = vmatprep.subr.bf16.mxu0 %v332_v3  ;;  %294 = vmatprep.mubr.msk.f32.mxu0 %vm42_vm0, %v20_v8  ;;  %v126_v10 = vld [vmem:[%s527_s3] sm:$0xff]  ;;  %v28_v13 = vld [vmem:[%s525_s1 + $0x30] sm:$0xff]  ;;  %v29_v14 = vld [vmem:[%s525_s1 + $0x38] sm:$0xff] }
   0x5   :  { %335 = vmatpush3.bf16.msra.mxu0 %v332_v3  ;;  %v356_v15 = vpack.c.bf16 %v127_v11, %v126_v10  ;;  %v129_v16 = vld [vmem:[%s527_s3 + $0x18] sm:$0xff]  ;;  %v130_v18 = vld [vmem:[%s527_s3 + $0x20] sm:$0xff]  ;;  %v131_v19 = vld [vmem:[%s527_s3 + $0x28] sm:$0xff]  ;;  %v344_v20 = vpack.c.bf16 %v29_v14, %v28_v13 }
   0x6   :  { %337 = vmatprep.subr.bf16.mxu0 %v336_v5  ;;  %v360_v17 = vpack.c.bf16 %v129_v16, %v128_v12  ;;  %v30_v21 = vld [vmem:[%s525_s1 + $0x40] sm:$0xff]  ;;  %v31_v22 = vld [vmem:[%s525_s1 + $0x48] sm:$0xff]  ;;  %v364_v23 = vpack.c.bf16 %v131_v19, %v130_v18  ;;  %v132_v24 = vld [vmem:[%s527_s3 + $0x30] sm:$0xff] }
   0x7   :  { %357 = vmatprep.subr.bf16.mxu1 %v356_v15  ;;  %v133_v25 = vld [vmem:[%s527_s3 + $0x38] sm:$0xff]  ;;  %v348_v26 = vpack.c.bf16 %v31_v22, %v30_v21  ;;  %v32_v27 = vld [vmem:[%s525_s1 + $0x50] sm:$0xff]  ;;  %v134_v30 = vld [vmem:[%s527_s3 + $0x40] sm:$0xff] }
   0x8   :  { %359 = vmatpush3.bf16.msra.mxu1 %v356_v15  ;;  %v33_v28 = vld [vmem:[%s525_s1 + $0x58] sm:$0xff]  ;;  %v368_v29 = vpack.c.bf16 %v133_v25, %v132_v24  ;;  %v135_v31 = vld [vmem:[%s527_s3 + $0x48] sm:$0xff]  ;;  %v136_v34 = vld [vmem:[%s527_s3 + $0x50] sm:$0xff] }
   0x9   :  { %339 = vmatpush3.bf16.msra.mxu0 %v336_v5  ;;  %361 = vmatprep.subr.bf16.mxu1 %v360_v17  ;;  %v352_v32 = vpack.c.bf16 %v33_v28, %v32_v27  ;;  %v372_v33 = vpack.c.bf16 %v135_v31, %v134_v30  ;;  %v137_v35 = vld [vmem:[%s527_s3 + $0x58] sm:$0xff]  ;;  %v34_v36 = vld [vmem:[%s525_s1 + $0x60] sm:$0xff]  ;;  %v139_v39 = vld [vmem:[%s527_s3 + $0x68] sm:$0xff] }
   0xa   :  { %341 = vmatprep.subr.bf16.mxu0 %v340_v9  ;;  %v376_v37 = vpack.c.bf16 %v137_v35, %v136_v34  ;;  %v138_v38 = vld [vmem:[%s527_s3 + $0x60] sm:$0xff]  ;;  %v21_v40 = vld [vmem:[%s526_s0 + $0x8] sm:$0xff]  ;;  %v140_v42 = vld [vmem:[%s527_s3 + $0x70] sm:$0xff] }
   0xb   :  { %v380_v41 = vpack.c.bf16 %v139_v39, %v138_v38  ;;  %v141_v43 = vld [vmem:[%s527_s3 + $0x78] sm:$0xff]  ;;  %v231_v45 = vld [vmem:[%s528_s2] ss:$0 sm:$0xff] }
   0xc   :  { %363 = vmatpush3.bf16.msra.mxu1 %v360_v17  ;;  %v384_v44 = vpack.c.bf16 %v141_v43, %v140_v42  ;;  %v234_v52 = vld [vmem:[%s529_s4] ss:$0 sm:$0xff] }
   0xd   :  { %343 = vmatpush3.bf16.msra.mxu0 %v340_v9  ;;  %365 = vmatprep.subr.bf16.mxu1 %v364_v23 }
   0xe   :  { %345 = vmatprep.subr.bf16.mxu0 %v344_v20 }
  0x10   :  { %367 = vmatpush3.bf16.msra.mxu1 %v364_v23 }
  0x11   :  { %347 = vmatpush3.bf16.msra.mxu0 %v344_v20  ;;  %369 = vmatprep.subr.bf16.mxu1 %v368_v29 }
  0x12   :  { %349 = vmatprep.subr.bf16.mxu0 %v348_v26 }
  0x14   :  { %371 = vmatpush3.bf16.msra.mxu1 %v368_v29 }
  0x15   :  { %351 = vmatpush3.bf16.msra.mxu0 %v348_v26  ;;  %373 = vmatprep.subr.bf16.mxu1 %v372_v33 }
  0x16   :  { %353 = vmatprep.subr.bf16.mxu0 %v352_v32 }
  0x18   :  { %375 = vmatpush3.bf16.msra.mxu1 %v372_v33 }
  0x19   :  { %355 = vmatpush3.bf16.msra.mxu0 %v352_v32  ;;  %377 = vmatprep.subr.bf16.mxu1 %v376_v37 }
  0x1a   :  { %292 = vmatprep.subr.mxu0 %v34_v36 }
  0x1c   :  { %379 = vmatpush3.bf16.msra.mxu1 %v376_v37 }
  0x1d   :  { %293 = vmatpush3.msra.mxu0 %v34_v36  ;;  %381 = vmatprep.subr.bf16.mxu1 %v380_v41 }
  0x1e   :  { %295 = vmatmul.mubr.msk.f32.vlgmr.msra.gmra.mrb[0].mxu0 %vm42_vm0, %v21_v40 }
  0x20   :  { %383 = vmatpush3.bf16.msra.mxu1 %v380_v41 }
  0x21   :  { %385 = vmatprep.subr.bf16.mxu1 %v384_v44 }
  0x24   :  { %387 = vmatpush3.bf16.msra.mxu1 %v384_v44 }
  0xf1   :  { %v296_v46 = vpop.f32.mrb[0].mxu0 }
  0xf2   :  { %v121_v47 = vadd.f32 %v296_v46, %v231_v45  ;;  %v115_v48 = vpop.f32.mrb[1].mxu0 }
  0xf3   :  { %v116_v49 = vadd.f32 %v231_v45, %v115_v48 }
  0xf4   :  { %v125_v51 = vmax.f32 %v121_v47, 0.0 }
  0xf5   :  { %v124_v50 = vmax.f32 %v116_v49, 0.0 }
  0xf7   :  { %329 = vmatprep.mubr.f32.mxu1 %v124_v50 }
  0xf8   :  { %330 = vmatmul.mubr.f32.vlgmr.msra.gmra.mrb[0].mxu1 %v125_v51 }
 0x1cb   :  { %v331_v53 = vpop.f32.mrb[0].mxu1 }
 0x1cc   :  { %v221_v54 = vadd.f32 %v331_v53, %v234_v52  ;;  %v215_v55 = vpop.f32.mrb[1].mxu1 }
 0x1cd   :  { %v216_v56 = vadd.f32 %v234_v52, %v215_v55 }
 0x1ce   :  { %226 = vst.msk [vmem:[%s530_s5 + $0x8] sm:$0xff] %vm224_vm1, %v221_v54 }
 0x1cf   :  { %225 = vst.msk [vmem:[%s530_s5] sm:$0xff] %vm224_vm1, %v216_v56 }

</bundles_post_ra>
